<compile_context>
chip_gen: v7x
topology: tpu7x:2x2x1
jax: 0.10.0
libtpu: 0.0.40
codegen_flags: <defaults>
</compile_context>

<pallas_src>
import functools

import jax
import jax.numpy as jnp
import numpy as np
from jax import lax
from jax.experimental import pallas as pl
from jax.experimental.pallas import tpu as pltpu


def _round_up(x, m):
    return ((x + m - 1) // m) * m


def _equilibrium_kernel(feat_ref, ppad_ref, w_ref, out_ref, dpad_ref, *,
                        W, HW, HW_pad, PAD):
    """feat_ref/out_ref: (bblk, C, HW_pad) VMEM; ppad_ref: (bblk, 1, HW+2W)
    (flat p with one replicated row of padding each side); w_ref: (C, 10) =
    [-alpha*weight taps | -alpha*bias]; dpad_ref: (bblk, HW_pad+2*PAD) f32
    scratch holding the zero-padded divergence."""
    bblk = feat_ref.shape[0]
    Wd = HW_pad + 2 * PAD

    # Column-boundary masks, once per grid step (lane width HW_pad).
    fidx = lax.broadcasted_iota(jnp.int32, (1, HW_pad), 1)
    if W & (W - 1) == 0:                 # power-of-two width: bitwise mod
        col = jnp.bitwise_and(fidx, W - 1)
    else:                                # generic: single floor-div, no concat
        col = fidx - (fidx // W) * W
    not_first = col != 0
    not_last = col != (W - 1)
    nf, nl = not_first[:, :HW], not_last[:, :HW]

    # ---- Batched central-difference divergence (all bblk sublanes at once).
    # Row clamps come from the replicated pad rows added in the wrapper;
    # column clamps via masks.
    pp = ppad_ref[:, 0, :].astype(jnp.float32)          # (bblk, HW + 2W)

    def pwin(d):
        return pp[:, W + d: W + d + HW]

    pc = pwin(0)
    p_r = jnp.where(nl, pwin(1), pc)
    p_l = jnp.where(nf, pwin(-1), pc)
    div = 0.5 * ((p_r - p_l) + (pwin(W) - pwin(-W)))    # (bblk, HW)

    # ---- Zero-padded divergence slab in VMEM scratch (no per-image concat).
    # Only the pad strips are (re)zeroed; the interior store is lane-aligned.
    dpad_ref[:, :PAD] = jnp.zeros((bblk, PAD), jnp.float32)
    dpad_ref[:, PAD + HW:] = jnp.zeros((bblk, Wd - PAD - HW), jnp.float32)
    dpad_ref[:, PAD:PAD + HW] = div

    w = w_ref[...]                                      # (C, 10), -alpha folded
    ones_row = jnp.ones((1, HW_pad), jnp.float32)       # bias "tap" (hoisted)

    # TODO(synk): for very large H*W add a lane-tiling grid axis with a
    # one-row halo so the per-image taps slab stays within a few vregs.
    @pl.loop(0, bblk)
    def _(bb):
        row = dpad_ref[pl.ds(bb, 1), :]                 # (1, Wd)
        taps = []
        for ki in range(3):                             # 3x3 correlation taps,
            for kj in range(3):                         # row-major = weight.reshape(C, 9)
                s = PAD + (ki - 1) * W + (kj - 1)
                t = row[:, s:s + HW_pad]
                if kj == 0:
                    t = jnp.where(not_first, t, 0.0)
                elif kj == 2:
                    t = jnp.where(not_last, t, 0.0)
                taps.append(t)
        taps.append(ones_row)
        tmat = jnp.concatenate(taps, axis=0)            # (10, HW_pad) im2col slab
        corr = jnp.dot(w, tmat,                         # (C, HW_pad) on the MXU
                       precision=jax.lax.Precision.HIGHEST,
                       preferred_element_type=jnp.float32)
        out_ref[bb] = (feat_ref[bb].astype(jnp.float32) + corr).astype(out_ref.dtype)


def equilibrium_layer(feat, p_map, weight, bias, alpha=0.1):
    """feat: (B,C,H,W), p_map: (B,1,H,W), weight: (C,1,3,3), bias: (C,)."""
    B, C, H, W = feat.shape
    HW = H * W
    HW_pad = _round_up(HW, 128)          # lane-dense feat/out blocks, generic shapes
    PAD = _round_up(W + 1, 128)          # zero-pad width around div (aligned interior)

    # Fold -alpha into the conv parameters; bias becomes a 10th "tap" column.
    w_taps = (-alpha) * weight.reshape(C, 9).astype(jnp.float32)
    b_tap = (-alpha) * bias.astype(jnp.float32).reshape(C, 1)
    w10 = jnp.concatenate([w_taps, b_tap], axis=1)      # (C, 10)

    # Lane-dense flat layout (free reshape of contiguous NCHW data) + lane pad.
    feat_f = feat.reshape(B, C, HW)
    if HW_pad != HW:
        feat_f = jnp.pad(feat_f, ((0, 0), (0, 0), (0, HW_pad - HW)))
    p_flat = p_map.reshape(B, 1, HW)
    # One replicated row of padding each side -> no row-boundary masks in-kernel.
    p_pad = jnp.concatenate(
        [p_flat[:, :, :W], p_flat, p_flat[:, :, HW - W:]], axis=2)  # (B,1,HW+2W)

    # Block sizing: include the x2 double-buffer factor and the f32 scratch,
    # target a multi-MiB block, and keep >= 2 grid steps for v7x's two cores.
    per_img = (2 * 2 * C * HW_pad * feat.dtype.itemsize          # feat + out, 2-buffered
               + 2 * (HW + 2 * W) * p_map.dtype.itemsize         # ppad, 2-buffered
               + (HW_pad + 2 * PAD) * 4)                         # dpad f32 scratch
    budget = 6 * 1024 * 1024
    bblk = max(1, int(budget // per_img))
    if B >= 2:
        bblk = min(bblk, B // 2)         # grid has >= 2 steps -> both v7x TCs busy
    bblk = max(1, min(bblk, B))
    while B % bblk:
        bblk -= 1

    kernel = functools.partial(_equilibrium_kernel, W=W, HW=HW,
                               HW_pad=HW_pad, PAD=PAD)
    out = pl.pallas_call(
        kernel,
        out_shape=jax.ShapeDtypeStruct((B, C, HW_pad), feat.dtype),
        grid_spec=pltpu.PrefetchScalarGridSpec(
            num_scalar_prefetch=0,
            grid=(B // bblk,),
            in_specs=[
                pl.BlockSpec((bblk, C, HW_pad), lambda b: (b, 0, 0)),
                pl.BlockSpec((bblk, 1, HW + 2 * W), lambda b: (b, 0, 0)),
                pl.BlockSpec((C, 10), lambda b: (0, 0)),
            ],
            out_specs=pl.BlockSpec((bblk, C, HW_pad), lambda b: (b, 0, 0)),
            scratch_shapes=[pltpu.VMEM((bblk, HW_pad + 2 * PAD), jnp.float32)],
        ),
        compiler_params=pltpu.CompilerParams(
            dimension_semantics=("parallel",),   # batch blocks are independent
            vmem_limit_bytes=48 * 1024 * 1024,   # plenty; still fits v7x 64 MiB VMEM
        ),
    )(feat_f, p_pad, w10)

    if HW_pad != HW:
        out = out[:, :, :HW]
    return out.reshape(B, C, H, W)


def _reference(feat, p_map, weight, bias, alpha):
    # Pure-JAX mirror of the PyTorch forward, used only for verification.
    p_pad = jnp.pad(p_map, ((0, 0), (0, 0), (1, 1), (1, 1)), mode="edge")
    dx = (p_pad[:, :, 1:-1, 2:] - p_pad[:, :, 1:-1, :-2]) * 0.5
    dy = (p_pad[:, :, 2:, 1:-1] - p_pad[:, :, 0:-2, 1:-1]) * 0.5
    div = dx + dy
    corr = lax.conv_general_dilated(
        div, weight, window_strides=(1, 1), padding=((1, 1), (1, 1)),
        dimension_numbers=("NCHW", "OIHW", "NCHW"))
    corr = corr + bias.reshape(1, -1, 1, 1)
    return feat - alpha * corr


if __name__ == "__main__":
    key = jax.random.PRNGKey(0)
    k1, k2, k3, k4 = jax.random.split(key, 4)

    B, C, H, W = 2, 4, 16, 16
    alpha = 0.1

    feat = jax.random.normal(k1, (B, C, H, W), jnp.float32)
    p_map = jax.random.normal(k2, (B, 1, H, W), jnp.float32)

    # Deterministic Conv2d(1, C, 3, padding=1)-style init: fan_in = 1*3*3 = 9
    bound = 1.0 / 3.0
    weight = jax.random.uniform(k3, (C, 1, 3, 3), jnp.float32, -bound, bound)
    bias = jax.random.uniform(k4, (C,), jnp.float32, -bound, bound)

    out = equilibrium_layer(feat, p_map, weight, bias, alpha)
    out = jax.block_until_ready(out)

    ref = _reference(feat, p_map, weight, bias, alpha)
    np.testing.assert_allclose(np.asarray(out), np.asarray(ref),
                               rtol=1e-5, atol=1e-5)
    print("KERNEL_OK")
</pallas_src>

<mosaic_0001>
module attributes {stable_mosaic.version = 11 : i64} {
  func.func @_equilibrium_kernel(%arg0: i32, %arg1: memref<1x4x256xf32, #tpu.memory_space<vmem>>, %arg2: memref<1x1x288xf32, #tpu.memory_space<vmem>>, %arg3: memref<4x10xf32, #tpu.memory_space<vmem>>, %arg4: memref<1x4x256xf32, #tpu.memory_space<vmem>>, %arg5: memref<1x512xf32, #tpu.memory_space<vmem>>) attributes {dimension_semantics = [#tpu.dimension_semantics<parallel>], iteration_bounds = array<i64: 2>, scalar_prefetch = 0 : i64, scratch_operands = 1 : i64, tpu.core_type = #tpu.core_type<tc>, window_params = [{transform_indices = @transform_0, window_bounds = array<i64: 1, 4, 256>}, {transform_indices = @transform_1, window_bounds = array<i64: 1, 1, 288>}, {pipeline_mode = #tpu.pipeline_mode<synchronous>, transform_indices = @transform_2, window_bounds = array<i64: 4, 10>}, {transform_indices = @transform_3, window_bounds = array<i64: 1, 4, 256>}]} {
    %0 = tpu.iota {dimensions = array<i32: 1>} : vector<1x256xi32>
    %c15_i32 = arith.constant 15 : i32
    %1 = vector.broadcast %c15_i32 : i32 to vector<1x256xi32>
    %2 = arith.andi %0, %1 : vector<1x256xi32>
    %c0_i32 = arith.constant 0 : i32
    %3 = vector.broadcast %c0_i32 : i32 to vector<1x256xi32>
    %4 = arith.cmpi ne, %2, %3 : vector<1x256xi32>
    %c15_i32_0 = arith.constant 15 : i32
    %5 = vector.broadcast %c15_i32_0 : i32 to vector<1x256xi32>
    %6 = arith.cmpi ne, %2, %5 : vector<1x256xi32>
    %c0 = arith.constant 0 : index
    %c0_1 = arith.constant 0 : index
    %c0_2 = arith.constant 0 : index
    %7 = vector.load %arg2[%c0, %c0_1, %c0_2] : memref<1x1x288xf32, #tpu.memory_space<vmem>>, vector<1x1x288xf32>
    %8 = vector.shape_cast %7 : vector<1x1x288xf32> to vector<1x288xf32>
    %9 = vector.extract_strided_slice %8 {offsets = [0, 16], sizes = [1, 256], strides = [1, 1]} : vector<1x288xf32> to vector<1x256xf32>
    %10 = vector.extract_strided_slice %8 {offsets = [0, 17], sizes = [1, 256], strides = [1, 1]} : vector<1x288xf32> to vector<1x256xf32>
    %11 = arith.select %6, %10, %9 : vector<1x256xi1>, vector<1x256xf32>
    %12 = vector.extract_strided_slice %8 {offsets = [0, 15], sizes = [1, 256], strides = [1, 1]} : vector<1x288xf32> to vector<1x256xf32>
    %13 = arith.select %4, %12, %9 : vector<1x256xi1>, vector<1x256xf32>
    %14 = arith.subf %11, %13 : vector<1x256xf32>
    %15 = vector.extract_strided_slice %8 {offsets = [0, 32], sizes = [1, 256], strides = [1, 1]} : vector<1x288xf32> to vector<1x256xf32>
    %16 = vector.extract_strided_slice %8 {offsets = [0, 0], sizes = [1, 256], strides = [1, 1]} : vector<1x288xf32> to vector<1x256xf32>
    %17 = arith.subf %15, %16 : vector<1x256xf32>
    %18 = arith.addf %14, %17 : vector<1x256xf32>
    %cst = arith.constant 5.000000e-01 : f32
    %19 = vector.broadcast %cst : f32 to vector<1x256xf32>
    %20 = arith.mulf %19, %18 : vector<1x256xf32>
    %cst_3 = arith.constant 0.000000e+00 : f32
    %21 = vector.broadcast %cst_3 : f32 to vector<1x128xf32>
    %c0_4 = arith.constant 0 : index
    %c0_5 = arith.constant 0 : index
    %22 = vector.load %arg5[%c0_4, %c0_5] : memref<1x512xf32, #tpu.memory_space<vmem>>, vector<1x128xf32>
    tpu.vector_store %arg5[%c0_4, %c0_5], %21 {strides = array<i32>} : memref<1x512xf32, #tpu.memory_space<vmem>>, vector<1x128xf32>,
    %cst_6 = arith.constant 0.000000e+00 : f32
    %23 = vector.broadcast %cst_6 : f32 to vector<1x128xf32>
    %c0_7 = arith.constant 0 : index
    %c384 = arith.constant 384 : index
    %24 = vector.load %arg5[%c0_7, %c384] : memref<1x512xf32, #tpu.memory_space<vmem>>, vector<1x128xf32>
    tpu.vector_store %arg5[%c0_7, %c384], %23 {strides = array<i32>} : memref<1x512xf32, #tpu.memory_space<vmem>>, vector<1x128xf32>,
    %c0_8 = arith.constant 0 : index
    %c128 = arith.constant 128 : index
    %25 = vector.load %arg5[%c0_8, %c128] : memref<1x512xf32, #tpu.memory_space<vmem>>, vector<1x256xf32>
    tpu.vector_store %arg5[%c0_8, %c128], %20 {strides = array<i32>} : memref<1x512xf32, #tpu.memory_space<vmem>>, vector<1x256xf32>,
    %c0_9 = arith.constant 0 : index
    %c0_10 = arith.constant 0 : index
    %26 = vector.load %arg3[%c0_9, %c0_10] : memref<4x10xf32, #tpu.memory_space<vmem>>, vector<4x10xf32>
    %cst_11 = arith.constant 1.000000e+00 : f32
    %27 = vector.broadcast %cst_11 : f32 to vector<1x256xf32>
    %c0_i32_12 = arith.constant 0 : i32
    %c1_i32 = arith.constant 1 : i32
    %28 = arith.muli %c0_i32_12, %c1_i32 : i32
    %c0_i32_13 = arith.constant 0 : i32
    %29 = arith.addi %c0_i32_13, %28 : i32
    %30 = arith.index_cast %29 : i32 to index
    %c0_14 = arith.constant 0 : index
    %31 = vector.load %arg5[%30, %c0_14] : memref<1x512xf32, #tpu.memory_space<vmem>>, vector<1x512xf32>
    %32 = vector.extract_strided_slice %31 {offsets = [0, 111], sizes = [1, 256], strides = [1, 1]} : vector<1x512xf32> to vector<1x256xf32>
    %cst_15 = arith.constant 0.000000e+00 : f32
    %33 = vector.broadcast %cst_15 : f32 to vector<1x256xf32>
    %34 = arith.select %4, %32, %33 : vector<1x256xi1>, vector<1x256xf32>
    %35 = vector.extract_strided_slice %31 {offsets = [0, 112], sizes = [1, 256], strides = [1, 1]} : vector<1x512xf32> to vector<1x256xf32>
    %36 = vector.extract_strided_slice %31 {offsets = [0, 113], sizes = [1, 256], strides = [1, 1]} : vector<1x512xf32> to vector<1x256xf32>
    %cst_16 = arith.constant 0.000000e+00 : f32
    %37 = vector.broadcast %cst_16 : f32 to vector<1x256xf32>
    %38 = arith.select %6, %36, %37 : vector<1x256xi1>, vector<1x256xf32>
    %39 = vector.extract_strided_slice %31 {offsets = [0, 127], sizes = [1, 256], strides = [1, 1]} : vector<1x512xf32> to vector<1x256xf32>
    %cst_17 = arith.constant 0.000000e+00 : f32
    %40 = vector.broadcast %cst_17 : f32 to vector<1x256xf32>
    %41 = arith.select %4, %39, %40 : vector<1x256xi1>, vector<1x256xf32>
    %42 = vector.extract_strided_slice %31 {offsets = [0, 128], sizes = [1, 256], strides = [1, 1]} : vector<1x512xf32> to vector<1x256xf32>
    %43 = vector.extract_strided_slice %31 {offsets = [0, 129], sizes = [1, 256], strides = [1, 1]} : vector<1x512xf32> to vector<1x256xf32>
    %cst_18 = arith.constant 0.000000e+00 : f32
    %44 = vector.broadcast %cst_18 : f32 to vector<1x256xf32>
    %45 = arith.select %6, %43, %44 : vector<1x256xi1>, vector<1x256xf32>
    %46 = vector.extract_strided_slice %31 {offsets = [0, 143], sizes = [1, 256], strides = [1, 1]} : vector<1x512xf32> to vector<1x256xf32>
    %cst_19 = arith.constant 0.000000e+00 : f32
    %47 = vector.broadcast %cst_19 : f32 to vector<1x256xf32>
    %48 = arith.select %4, %46, %47 : vector<1x256xi1>, vector<1x256xf32>
    %49 = vector.extract_strided_slice %31 {offsets = [0, 144], sizes = [1, 256], strides = [1, 1]} : vector<1x512xf32> to vector<1x256xf32>
    %50 = vector.extract_strided_slice %31 {offsets = [0, 145], sizes = [1, 256], strides = [1, 1]} : vector<1x512xf32> to vector<1x256xf32>
    %cst_20 = arith.constant 0.000000e+00 : f32
    %51 = vector.broadcast %cst_20 : f32 to vector<1x256xf32>
    %52 = arith.select %6, %50, %51 : vector<1x256xi1>, vector<1x256xf32>
    %53 = tpu.concatenate %34, %35, %38, %41, %42, %45, %48, %49, %52, %27 in 0 : vector<1x256xf32>, vector<1x256xf32>, vector<1x256xf32>, vector<1x256xf32>, vector<1x256xf32>, vector<1x256xf32>, vector<1x256xf32>, vector<1x256xf32>, vector<1x256xf32>, vector<1x256xf32> -> vector<10x256xf32>
    %cst_21 = arith.constant dense<0.000000e+00> : vector<4x256xf32>
    %54 = tpu.matmul %26, %53, %cst_21 {dimension_numbers = #tpu.dot_dimension_numbers<[1], [0], [0], [1], [0, 0, 1, 1], [], []>, precision = #tpu.contract_precision<fp32>} : vector<4x10xf32>, vector<10x256xf32>, vector<4x256xf32> -> vector<4x256xf32>
    %55 = arith.index_cast %29 : i32 to index
    %c0_22 = arith.constant 0 : index
    %c0_23 = arith.constant 0 : index
    %56 = vector.load %arg1[%55, %c0_22, %c0_23] : memref<1x4x256xf32, #tpu.memory_space<vmem>>, vector<1x4x256xf32>
    %57 = vector.shape_cast %56 : vector<1x4x256xf32> to vector<4x256xf32>
    %58 = arith.addf %57, %54 : vector<4x256xf32>
    %59 = arith.index_cast %29 : i32 to index
    %c0_24 = arith.constant 0 : index
    %c0_25 = arith.constant 0 : index
    %60 = vector.load %arg4[%59, %c0_24, %c0_25] : memref<1x4x256xf32, #tpu.memory_space<vmem>>, vector<1x4x256xf32>
    %61 = vector.shape_cast %60 : vector<1x4x256xf32> to vector<4x256xf32>
    %62 = vector.shape_cast %58 : vector<4x256xf32> to vector<1x4x256xf32>
    tpu.vector_store %arg4[%59, %c0_24, %c0_25], %62 {strides = array<i32>} : memref<1x4x256xf32, #tpu.memory_space<vmem>>, vector<1x4x256xf32>,
    %c1_i32_26 = arith.constant 1 : i32
    return
  }
  func.func @transform_0(%arg0: i32) -> (i32, i32, i32) {
    %c0_i32 = arith.constant 0 : i32
    %c0_i32_0 = arith.constant 0 : i32
    %c0_i32_1 = arith.constant 0 : i32
    return %arg0, %c0_i32, %c0_i32_0 : i32, i32, i32
  }
  func.func @transform_1(%arg0: i32) -> (i32, i32, i32) {
    %c0_i32 = arith.constant 0 : i32
    %c0_i32_0 = arith.constant 0 : i32
    %c0_i32_1 = arith.constant 0 : i32
    return %arg0, %c0_i32, %c0_i32_0 : i32, i32, i32
  }
  func.func @transform_2(%arg0: i32) -> (i32, i32) {
    %c0_i32 = arith.constant 0 : i32
    %c0_i32_0 = arith.constant 0 : i32
    %c0_i32_1 = arith.constant 0 : i32
    return %c0_i32, %c0_i32_0 : i32, i32
  }
  func.func @transform_3(%arg0: i32) -> (i32, i32, i32) {
    %c0_i32 = arith.constant 0 : i32
    %c0_i32_0 = arith.constant 0 : i32
    %c0_i32_1 = arith.constant 0 : i32
    return %arg0, %c0_i32, %c0_i32_0 : i32, i32, i32
  }
}

</mosaic_0001>

<bundles_post_ra>
// kernel: tpu_custom_call.1
= control target key start
LH: loop header
LB: loop body
LE: loop exit
PB: predicated region body
PF: predicated region fallthrough
CT: control target
= control target key end

     0   :  { %8 = vsyncpa [#allocation4], 0  ;;  %s1791_s0 = inlined_call_operand.hbm [shape: f32[2,4,256], index: 0, kind: input, shape index: {}]   ;;  %s1792_s1 = inlined_call_operand.hbm [shape: f32[2,1,288], index: 1, kind: input, shape index: {}]   ;;  %s1793_s2 = inlined_call_operand.vmem [shape: f32[4,10], index: 2, kind: input, shape index: {}]   ;;  %s1794_s3 = inlined_call_operand.hbm [shape: f32[2,4,256], index: 3, kind: output, shape index: {}]  }
   0x1   :  { %10 = vsyncpa [#allocation4 + $0x1], 0 }
   0x2   :  { %11 = vsyncpa [#allocation7], 0 }
   0x3   :  { %13 = vsyncpa [#allocation7 + $0x1], 0 }
   0x4   :  { %14 = vsyncpa [#allocation5], 0 }
   0x5   :  { %16 = vsyncpa [#allocation5 + $0x1], 0  ;;  %s1414_s12 = smov 0   ;;  %s1416_s13 = smov 0  }
   0x6   :  { %s1418_s14 = smov 0   ;;  %s1420_s15 = smov 0  }
   0x7 LB: > { %s1435_s16 = sadd.s32 4294967295, %s1377_s15   ;;  %s1130_s17 = sadd.s32 4294967294, %s1377_s15   ;;  %s1377_s15 = sphi %s1420_s15, %s1821_s15   ;;  %s1373_s14 = sphi %s1418_s14, %s1820_s14   ;;  %s1369_s13 = sphi %s1416_s13, %s1819_s13   ;;  %s1365_s12 = sphi %s1414_s12, %s1818_s12  }
   0x8   : > { %s1439_s18 = sadd.s32 1, %s1377_s15   ;;  %s29_s19 = sadd.s32 1, %s1373_s14 }
   0x9   : > { %s26_s20 = ssub.s32 %s1377_s15, %s1439_s18  ;;  %p36_p0 = scmp.ne.s32.totalorder %s1373_s14, %s1369_s13 }
   0xa   : > { %p27_p1 = scmp.eq.s32.totalorder %s26_s20, 0  ;;  %p37_p2 = scmp.eq.s32.totalorder %s1377_s15, 0 }
   0xb   : > { %p42_p3 = scmp.ne.s32.totalorder %s1369_s13, %s1365_s12  ;;  %p43_p4 = scmp.eq.s32.totalorder %s1435_s16, 0 }
   0xc   : > { %s1451_s21 = scalar_select %p27_p1, %s1373_s14, %s29_s19  }
   0xd   : > { %p1453_p5 = por %p37_p2, %p36_p0  ;;  %p1457_p6 = por %p43_p4, %p42_p3 }
   0xe   : > { %p113_p7 = scmp.eq.s32.totalorder %s1435_s16, 1  ;;  %p119_p8 = scmp.eq.s32.totalorder %s1130_s17, 1 }
   0xf   : > { %s1798_s23 = scalar_select %p1457_p6, 1, 0 }
  0x10   : > { %p1201_p10 = scmp.lt.s32.totalorder %s1377_s15, 2  ;;  %p1464_p11 = por %p113_p7, %p36_p0 }
  0x11   : > { %p1468_p12 = por %p119_p8, %p42_p3  ;;  %s1473_s26 = sand.u32 1, %s1373_s14  }
  0x12   : > { %s1799_s24 = scalar_select %p1464_p11, 1, 0 }
  0x13   : > { %s1800_s25 = scalar_select %p1468_p12, 1, 0 }
  0x14   : > { %s1145_s27 = sshll.u32 %s1377_s15, 7  ;;  %s1133_s28 = sshll.u32 %s1473_s26, 3 }
  0x15   : > { %s1480_s4 = scalar_lea.hbm %s1791_s0, %s1145_s27  ;;  %s146_s5 = scalar_lea.vmem [#allocation3], %s1133_s28 }
  0x16   : > { %s154_s6 = sshll.u32 %s146_s5, 4  ;;  %p1484_p13 = pnand %p1201_p10, %p1453_p5  ;;  %s1488_s6 = int_to_ptr.vmem [resolvable:$true] %s154_s6 }
  0x17   : > { %s143_s8 = scalar_lea.sflag [#allocation4], %s1473_s26  ;;  %s1247_s9 = scalar_lea.hbm %s1480_s4, 128 }
  0x18   : > { %p1248_p2 = scmp.ne.s32.totalorder %s1480_s4, %s1247_s9  ;;  %p1249_p3 = pneg %p1484_p13 }
  0x19   : > { %s1252_s17 = scalar_lea.hbm %s1791_s0, 256  ;;  %p1253_p5 = scmp.lt.u32.totalorder %s1480_s4, %s1791_s0 }
  0x1a   : > { %p1250_p4 = pnand %p1249_p3, %p1248_p2  ;;  %p1254_p8 = scmp.lt.u32.totalorder %s1252_s17, %s1247_s9 }
  0x1b   : > { %p1256_p9 = scmp.lt.u32.totalorder %s1247_s9, %s1480_s4 }
  0x1c   : > { %p1251_p7 = pneg %p1250_p4  ;;  %p1255_p10 = por %p1254_p8, %p1253_p5 }
  0x1e   : > { %p1257_p0 = por %p1256_p9, %p1255_p10 }
  0x20   : > { %p1258_p1 = pnand %p1257_p0, %p1251_p7 }
  0x22   : > { %1261 = shalt.err (!%p1258_p1)
}
  0x23   : > { %s1262_s22 = scalar_lea.vmem %s1488_s6, 128  ;;  %s1379_s27 = smov [#allocation3]  }
  0x24   : > { %p1263_p2 = scmp.ne.s32.totalorder %s1488_s6, %s1262_s22  ;;  %s1267_s28 = sshll.u32 %s1379_s27, 4  ;;  %s1268_s28 = int_to_ptr.vmem [resolvable:$false] %s1267_s28 }
  0x25   : > { %s1269_s29 = scalar_lea.vmem %s1268_s28, 256  ;;  %p1270_p11 = scmp.lt.s32.totalorder %s1488_s6, %s1268_s28 }
  0x26   : > { %p1265_p4 = pnand %p1263_p2, %p1249_p3  ;;  %p1271_p5 = scmp.lt.s32.totalorder %s1269_s29, %s1262_s22 }
  0x28   : > { %p1266_p12 = pneg %p1265_p4  ;;  %p1272_p8 = por %p1271_p5, %p1270_p11 }
  0x2a   : > { %p1273_p9 = pnand %p1272_p8, %p1266_p12 }
  0x2c   : > { %1276 = shalt.err (!%p1273_p9)
}
  0x2d   : > { %1193 = dma.hbm_to_vmem [thread:$0]  (!%p1484_p13), %s1480_s4, 128, %s1488_s6, %s143_s8  }
  0x2e   : > { %p1802_p0 = scmp.lt.s32.totalorder %s1377_s15, 3  ;;  %p1803_p1 = scmp.ge.s32.totalorder %s1377_s15, 1 }
  0x2f   : > { %s1181_s5 = smul.u32 3, %s1473_s26  ;;  %s162_s4 = scalar_lea.sflag [#allocation7], %s1473_s26 }
  0x30   : > { %p1522_p7 = pnand %p1803_p1, %p1802_p0  ;;  %s1182_s9 = smul.u32 48, %s1377_s15 }
  0x31   : > { %s165_s19 = scalar_lea.vmem [#allocation6], %s1181_s5  ;;  %s1282_s27 = scalar_lea.hbm %s1792_s1, 96 }
  0x32   : > { %s1804_s30 = scalar_select %p1522_p7, 1, 0 }
  0x33   : > { %s1531_s17 = scalar_lea.hbm %s1792_s1, %s1182_s9  ;;  %s173_s20 = sshll.u32 %s165_s19, 4  ;;  %s174_s20 = int_to_ptr.vmem [resolvable:$true] %s173_s20 }
  0x34   : > { %s1277_s6 = scalar_lea.hbm %s1531_s17, 48  ;;  %p1283_p2 = scmp.lt.u32.totalorder %s1531_s17, %s1792_s1 }
  0x35   : > { %p1278_p11 = scmp.ne.s32.totalorder %s1531_s17, %s1277_s6  ;;  %p1284_p4 = scmp.lt.u32.totalorder %s1282_s27, %s1277_s6 }
  0x36   : > { %p1286_p8 = scmp.lt.u32.totalorder %s1277_s6, %s1531_s17 }
  0x37   : > { %p1280_p12 = pnand %p1278_p11, %p1249_p3  ;;  %p1285_p5 = por %p1284_p4, %p1283_p2 }
  0x39   : > { %p1281_p10 = pneg %p1280_p12  ;;  %p1287_p9 = por %p1286_p8, %p1285_p5 }
  0x3b   : > { %p1288_p0 = pnand %p1287_p9, %p1281_p10 }
  0x3d   : > { %1291 = shalt.err (!%p1288_p0)
}
  0x3e   : > { %s1292_s26 = scalar_lea.vmem %s174_s20, 48  ;;  %s1380_s5 = smov [#allocation6]  }
  0x3f   : > { %p1293_p1 = scmp.ne.s32.totalorder %s174_s20, %s1292_s26  ;;  %s1297_s9 = sshll.u32 %s1380_s5, 4  ;;  %s1298_s9 = int_to_ptr.vmem [resolvable:$false] %s1297_s9 }
  0x40   : > { %s1299_s10 = scalar_lea.vmem %s1298_s9, 96  ;;  %p1300_p6 = scmp.lt.s32.totalorder %s174_s20, %s1298_s9 }
  0x41   : > { %p1295_p11 = pnand %p1293_p1, %p1249_p3  ;;  %p1301_p7 = scmp.lt.s32.totalorder %s1299_s10, %s1292_s26 }
  0x43   : > { %p1296_p12 = pneg %p1295_p11  ;;  %p1302_p2 = por %p1301_p7, %p1300_p6 }
  0x45   : > { %p1303_p4 = pnand %p1302_p2, %p1296_p12 }
  0x47   : > { %1306 = shalt.err (!%p1303_p4)
}
  0x48   : > { %1196 = dma.hbm_to_vmem [thread:$0]  (!%p1484_p13), %s1531_s17, 48, %s174_s20, %s162_s4  }
  0x49   : > { %p1805_p10 = scmp.ne.s32.totalorder %s1804_s30, 0 }
  0x4a   : > { %s1556_s11 = sand.u32 (!%p1805_p10), 1, %s1369_s13   ;;  %p1806_p6 = scmp.ne.s32.totalorder (!%p1805_p10), %s1798_s23, 0 }
  0x4b   : > { %182 = sbr.rel (%p1805_p10) target bundleno = 769 (0x301), region = 32  ;;  %s1138_s19 = sshll.u32 (!%p1805_p10), %s1556_s11, 3 }
  0x4c   : > { %s185_s6 = scalar_lea.sflag (!%p1805_p10), [#allocation4], %s1556_s11  ;;  %s1562_s8 = scalar_lea.vmem (!%p1805_p10), [#allocation3], %s1138_s19 }
  0x52   : > { %1352 = dma.done.wait (%p1806_p6), %s185_s6, 128  }
  0x53   : > { %1354 = vsyncadd (%p1806_p6), %s185_s6, 4294967168  ;;  %s1183_s7 = smul.u32 3, %s1556_s11  ;;  %s194_s30 = scalar_lea.sflag [#allocation7], %s1556_s11 }
  0x55   : > { %s197_s17 = scalar_lea.vmem [#allocation6], %s1183_s7 }
  0x56   : > { %1356 = dma.done.wait (%p1806_p6), %s194_s30, 48  }
  0x57   : > { %1358 = vsyncadd (%p1806_p6), %s194_s30, 4294967248  ;;  %v225_v0 = vlaneseq  ;;  %v1381_v1 = vmov 0.0   ;;  %v234_v6 = vld [vmem:[%s197_s17] sm:$0x7]  ;;  %s1382_s23 = smov 32   ;;  %s1383_s20 = smov 111  }
  0x58   : > { %592 = vmatprep.mubr.f32.mxu1 %v1381_v1  ;;  %845 = vmatprep.mubr.f32.mxu0 %v1381_v1  ;;  %s1384_s4 = smov 112   ;;  %s1385_s22 = smov 113   ;;  %vm290_vm1 = vcmask 261120   ;;  %vm254_vm2 = vcmask 908288   ;;  %vm265_vm3 = vcmask 916480   ;;  %vm278_vm4 = vcmask 924672  }
  0x59   : > { %vm324_vm0 = vcmp.lt.s32.totalorder %v225_v0, 128  ;;  %v1578_v2 = vshrl.u32 %v225_v0, 7  ;;  %287 = vrot.lane.b32.xlu0 %v234_v6, %s1382_s23  ;;  %s1386_s27 = smov 96   ;;  %v226_v22 = vand.u32 127, %v225_v0  ;;  %vm313_vm9 = vcmask 785408   ;;  %s1388_s28 = smov 15  }
  0x5a   : > { %326 = vst.msk [vmem:[#allocation2] sm:$0x1] %vm324_vm0, %v1381_v1  ;;  %327 = vst.msk [vmem:[#allocation2 + $0x3] sm:$0x1] %vm324_vm0, %v1381_v1  ;;  %v1387_v44 = vmov 1966171168  }
  0x5b   : > { %v1583_v3 = vsub.s32 1, %v1578_v2  ;;  %v1586_v4 = vsub.s32 0, %v1578_v2  ;;  %v1589_v5 = vsub.s32 2, %v1578_v2  ;;  %v227_v25 = vadd.s32 128, %v226_v22  ;;  %s1389_s29 = smov 17   ;;  %s1390_s26 = smov 1  }
  0x5c   : > { %v228_v26 = vand.u32 15, %v226_v22  ;;  %v332_v45 = vunpack.c.l.s4 %v1387_v44  ;;  %vm346_vm10 = vcmp.lt.s32.totalorder %v225_v0, 256  ;;  %s1391_s5 = smov 16   ;;  %s1392_s9 = smov 127   ;;  %vm383_vm11 = vcmask 121856  }
  0x5d   : > { %v243_v7 = vrot.slane %v234_v6, %v1583_v3  ;;  %v239_v8 = vrot.slane %v234_v6, %v1586_v4  ;;  %v247_v9 = vrot.slane %v234_v6, %v1589_v5  ;;  %v229_v27 = vand.u32 15, %v227_v25  ;;  %s1146_s7 = sshll.u32 %s1435_s16, 7  ;;  %s224_s30 = scalar_lea.vmem [#allocation8], %s1138_s19 }
  0x5e   : > { %vm1607_vm5 = vcmp.ne.s32.totalorder %v228_v26, 15  ;;  %vm1613_vm6 = vcmp.ne.s32.totalorder %v228_v26, 0  ;;  %v333_v52 = vunpack.c.0.s8 %v332_v45  ;;  %vm514_vm12 = vcmask 80896   ;;  %s1037_s17 = sshll.u32 %s224_s30, 4  ;;  %p1815_p3 = scmp.ne.s32.totalorder %s1799_s24, 0  ;;  %s1749_s17 = int_to_ptr.vmem [resolvable:$true] %s1037_s17 }
  0x5f   : > { %250 = vrot.lane.b32.xlu1 %v243_v7, %s1383_s20  ;;  %248 = vrot.lane.b32.xlu0 %v239_v8, %s1383_s20  ;;  %vm1618_vm7 = vcmp.ne.s32.totalorder %v229_v27, 15  ;;  %vm1622_vm8 = vcmp.ne.s32.totalorder %v229_v27, 0  ;;  %vm370_vm13 = vcmask 138240   ;;  %vm450_vm14 = vcmask 130048   ;;  %s1393_s16 = smov [#allocation8]  }
  0x60   : > { %v336_v57 = vsub.s32 %v333_v52, %v1578_v2  ;;  %vm396_vm15 = vcmask 7168   ;;  %vm491_vm0 = vcmask 1040384   ;;  %s1311_s19 = sshll.u32 %s1393_s16, 4  ;;  %s1312_s19 = int_to_ptr.vmem [resolvable:$false] %s1311_s19 }
  0x61   : > { %p1314_p8 = scmp.lt.s32.totalorder %s1749_s17, %s1312_s19 }
  0x63   : > { %252 = vrot.lane.b32.xlu1 %v247_v9, %s1383_s20  ;;  %259 = vrot.lane.b32.xlu0 %v239_v8, %s1384_s4 }
  0x67   : > { %261 = vrot.lane.b32.xlu1 %v243_v7, %s1384_s4  ;;  %263 = vrot.lane.b32.xlu0 %v247_v9, %s1384_s4 }
  0x6b   : > { %272 = vrot.lane.b32.xlu1 %v239_v8, %s1385_s22  ;;  %274 = vrot.lane.b32.xlu0 %v243_v7, %s1385_s22 }
  0x6f   : > { %276 = vrot.lane.b32.xlu1 %v247_v9, %s1385_s22 }
  0xcb   : > { %v288_v10 = vpop.permute.xlu0 %287 }
  0xcc   : > { %v289_v11 = vrot.slane %v288_v10, 7 }
  0xce   : > { %v291_v12 = vsel %vm290_vm1, %v289_v11, %v288_v10  ;;  %vm494_vm1 = vcmask 1041408  }
  0xcf   : > { %v293_v13 = vsub.f32 %v234_v6, %v291_v12 }
  0xd1   : > { %v302_v14 = vrot.slane %v293_v13, %v1583_v3  ;;  %v298_v15 = vrot.slane %v293_v13, %v1586_v4  ;;  %v306_v16 = vrot.slane %v293_v13, %v1589_v5  ;;  %v251_v17 = vpop.permute.xlu1 %250  ;;  %v249_v18 = vpop.permute.xlu0 %248 }
  0xd2   : > { %v255_v31 = vsel %vm254_vm2, %v249_v18, %v251_v17 }
  0xd3   : > { %309 = vrot.lane.b32.xlu1 %v302_v14, %s1386_s27  ;;  %307 = vrot.lane.b32.xlu0 %v298_v15, %s1386_s27 }
  0xd5   : > { %v253_v19 = vpop.permute.xlu1 %252  ;;  %v260_v20 = vpop.permute.xlu0 %259 }
  0xd6   : > { %v256_v37 = vsel %vm254_vm2, %v251_v17, %v253_v19  ;;  %v349_v19 = vld [vmem:[%s1793_s2] sm:$0xf] }
  0xd7   : > { %311 = vrot.lane.b32.xlu0 %v306_v16, %s1386_s27  ;;  %v516_v25 = vsel %vm514_vm12, %v349_v19, 0  ;;  %s1307_s27 = scalar_lea.vmem %s1749_s17, 128 }
  0xd8   : > { %p1308_p13 = scmp.ne.s32.totalorder %s1749_s17, %s1307_s27 }
  0xd9   : > { %v262_v21 = vpop.permute.xlu1 %261  ;;  %v264_v23 = vpop.permute.xlu0 %263 }
  0xda   : > { %v266_v32 = vsel %vm265_vm3, %v260_v20, %v262_v21  ;;  %v267_v38 = vsel %vm265_vm3, %v262_v21, %v264_v23  ;;  %p1309_p7 = pnand %p1308_p13, %p1815_p3 }
  0xdb   : > { %v270_v40 = vsel %vm1607_vm5, %v255_v31, %v266_v32  ;;  %v271_v46 = vsel %vm1618_vm7, %v256_v37, %v267_v38 }
  0xdc   : > { %p1310_p5 = pneg %p1309_p7 }
  0xdd   : > { %v273_v24 = vpop.permute.xlu1 %272  ;;  %v275_v28 = vpop.permute.xlu0 %274 }
  0xde   : > { %v279_v34 = vsel %vm278_vm4, %v273_v24, %v275_v28 }
  0xdf   : > { %v283_v41 = vsel %vm1613_vm6, %v279_v34, %v266_v32 }
  0xe0   : > { %v285_v49 = vsub.f32 %v270_v40, %v283_v41  ;;  %v1681_v40 = vand.u32 4294901760, %v516_v25 }
  0xe1   : > { %v277_v30 = vpop.permute.xlu1 %276 }
  0xe2   : > { %v280_v39 = vsel %vm278_vm4, %v275_v28, %v277_v30 }
  0xe3   : > { %v284_v47 = vsel %vm1622_vm8, %v280_v39, %v267_v38 }
  0xe4   : > { %v286_v51 = vsub.f32 %v271_v46, %v284_v47 }
 0x145   : > { %v310_v42 = vpop.permute.xlu1 %309  ;;  %v308_v43 = vpop.permute.xlu0 %307 }
 0x146   : > { %v314_v48 = vsel %vm313_vm9, %v308_v43, %v310_v42 }
 0x147   : > { %v318_v50 = vadd.f32 %v314_v48, %v285_v49 }
 0x149   : > { %v312_v53 = vpop.permute.xlu0 %311  ;;  %v320_v56 = vmul.f32 0.5, %v318_v50 }
 0x14a   : > { %v315_v54 = vsel %vm313_vm9, %v310_v42, %v312_v53  ;;  %vm413_vm9 = vcmask 1039360  }
 0x14b   : > { %v319_v55 = vadd.f32 %v315_v54, %v286_v51 }
 0x14d   : > { %v321_v58 = vmul.f32 0.5, %v319_v55 }
 0x14f   : > { %v330_v59 = vcombine.low %v320_v56, %v321_v58 }
 0x151   : > { %v337_v60 = vrot.slane %v330_v59, %v336_v57 }
 0x153   : > { %v344_v61 = vrot.slane %v337_v60, %v336_v57 }
 0x155   : > { %348 = vst.msk [vmem:[#allocation2 + $0x1] sm:$0x3] %vm346_vm10, %v344_v61  ;;  %vm497_vm10 = vcmask 1042432  }
 0x15c   : > { %v350_v62 = vld [vmem:[#allocation2] sm:$0xf] }
 0x15d   : > { %v1640_v63 = vrot.slane %v350_v62, %v1589_v5  ;;  %v1643_v6 = vrot.slane %v350_v62, %v1583_v3  ;;  %v355_v0 = vrot.slane %v350_v62, %v1586_v4  ;;  %v405_v3 = vsub.s32 3, %v1578_v2 }
 0x15f   : > { %381 = vrot.lane.b32.xlu0 %v1640_v63, %s1388_s28  ;;  %379 = vrot.lane.b32.xlu1 %v1643_v6, %s1388_s28  ;;  %v406_v5 = vrot.slane %v350_v62, %v405_v3  ;;  %v1707_v3 = vsub.f32 %v516_v25, %v1681_v40 }
 0x163   : > { %368 = vrot.lane.b32.xlu0 %v1640_v63, %s1389_s29  ;;  %366 = vrot.lane.b32.xlu1 %v1643_v6, %s1389_s29 }
 0x167   : > { %392 = vrot.lane.b32.xlu0 %v1643_v6, %s1390_s26  ;;  %377 = vrot.lane.b32.xlu1 %v355_v0, %s1388_s28 }
 0x16b   : > { %364 = vrot.lane.b32.xlu0 %v355_v0, %s1389_s29  ;;  %394 = vrot.lane.b32.xlu1 %v1640_v63, %s1390_s26 }
 0x16f   : > { %446 = vrot.lane.b32.xlu0 %v1643_v6, %s1391_s5  ;;  %390 = vrot.lane.b32.xlu1 %v355_v0, %s1390_s26 }
 0x173   : > { %409 = vrot.lane.b32.xlu0 %v1640_v63, %s1392_s9  ;;  %448 = vrot.lane.b32.xlu1 %v1640_v63, %s1391_s5 }
 0x177   : > { %444 = vrot.lane.b32.xlu0 %v355_v0, %s1391_s5  ;;  %411 = vrot.lane.b32.xlu1 %v406_v5, %s1392_s9 }
 0x17b   : > { %422 = vrot.lane.b32.xlu0 %v1640_v63, %s1385_s22  ;;  %407 = vrot.lane.b32.xlu1 %v1643_v6, %s1392_s9 }
 0x17f   : > { %420 = vrot.lane.b32.xlu0 %v1643_v6, %s1385_s22  ;;  %424 = vrot.lane.b32.xlu1 %v406_v5, %s1385_s22  ;;  %s1023_s22 = scalar_lea.sflag [#allocation5], %s1556_s11 }
 0x183   : > { %436 = vrot.lane.b32.xlu0 %v406_v5, %s1383_s20  ;;  %434 = vrot.lane.b32.xlu1 %v1640_v63, %s1383_s20 }
 0x187   : > { %483 = vrot.lane.b32.xlu0 %v1640_v63, %s1384_s4  ;;  %432 = vrot.lane.b32.xlu1 %v1643_v6, %s1383_s20 }
 0x18b   : > { %481 = vrot.lane.b32.xlu0 %v1643_v6, %s1384_s4  ;;  %485 = vrot.lane.b32.xlu1 %v406_v5, %s1384_s4  ;;  %s1747_s4 = scalar_lea.hbm %s1794_s3, %s1146_s7 }
 0x1d1   : > { %v382_v2 = vpop.permute.xlu0 %381  ;;  %v380_v4 = vpop.permute.xlu1 %379 }
 0x1d2   : > { %v385_v23 = vsel %vm383_vm11, %v380_v4, %v382_v2 }
 0x1d3   : > { %v389_v32 = vsel %vm1618_vm7, %v385_v23, 0.0 }
 0x1d4   : > { %v458_v49 = vrot.slane %v389_v32, 6 }
 0x1d5   : > { %v369_v7 = vpop.permute.xlu0 %368  ;;  %v367_v8 = vpop.permute.xlu1 %366 }
 0x1d6   : > { %v372_v26 = vsel %vm370_vm13, %v367_v8, %v369_v7 }
 0x1d7   : > { %v376_v41 = vsel %vm1622_vm8, %v372_v26, 0.0 }
 0x1d9   : > { %v393_v9 = vpop.permute.xlu0 %392  ;;  %v378_v10 = vpop.permute.xlu1 %377 }
 0x1da   : > { %v384_v20 = vsel %vm383_vm11, %v378_v10, %v380_v4  ;;  %vm500_vm11 = vcmask 1043456  }
 0x1db   : > { %v388_v30 = vsel %vm1607_vm5, %v384_v20, 0.0 }
 0x1dc   : > { %v457_v45 = vrot.slane %v388_v30, 6 }
 0x1dd   : > { %v365_v11 = vpop.permute.xlu0 %364  ;;  %v395_v12 = vpop.permute.xlu1 %394 }
 0x1de   : > { %v371_v24 = vsel %vm370_vm13, %v365_v11, %v367_v8  ;;  %v398_v37 = vsel %vm396_vm15, %v393_v9, %v395_v12 }
 0x1df   : > { %v375_v34 = vsel %vm1613_vm6, %v371_v24, 0.0  ;;  %v402_v50 = vsel %vm1622_vm8, %v398_v37, 0.0 }
 0x1e0   : > { %v464_v61 = vrot.slane %v402_v50, 5 }
 0x1e1   : > { %v447_v13 = vpop.permute.xlu0 %446  ;;  %v391_v14 = vpop.permute.xlu1 %390 }
 0x1e2   : > { %v397_v27 = vsel %vm396_vm15, %v391_v14, %v393_v9 }
 0x1e3   : > { %v401_v42 = vsel %vm1613_vm6, %v397_v27, 0.0 }
 0x1e4   : > { %v463_v52 = vrot.slane %v401_v42, 5 }
 0x1e5   : > { %v410_v15 = vpop.permute.xlu0 %409  ;;  %v449_v16 = vpop.permute.xlu1 %448 }
 0x1e6   : > { %v452_v31 = vsel %vm450_vm14, %v447_v13, %v449_v16 }
 0x1e7   : > { %v493_v46 = vsel %vm491_vm0, %v376_v41, %v452_v31 }
 0x1e8   : > { %v496_v57 = vsel %vm494_vm1, %v493_v46, %v458_v49 }
 0x1e9   : > { %v445_v17 = vpop.permute.xlu0 %444  ;;  %v412_v18 = vpop.permute.xlu1 %411  ;;  %v499_v33 = vsel %vm497_vm10, %v496_v57, %v464_v61 }
 0x1ea   : > { %v451_v28 = vsel %vm450_vm14, %v445_v17, %v447_v13  ;;  %v415_v47 = vsel %vm413_vm9, %v410_v15, %v412_v18  ;;  %v502_v16 = vsel %vm500_vm11, %v499_v33, %v1640_v63 }
 0x1eb   : > { %v492_v43 = vsel %vm491_vm0, %v375_v34, %v451_v28  ;;  %v419_v58 = vsel %vm1618_vm7, %v415_v47, 0.0 }
 0x1ec   : > { %v495_v53 = vsel %vm494_vm1, %v492_v43, %v457_v45  ;;  %v472_v7 = vrot.slane %v419_v58, 3 }
 0x1ed   : > { %v423_v21 = vpop.permute.xlu0 %422  ;;  %v408_v22 = vpop.permute.xlu1 %407  ;;  %v498_v5 = vsel %vm497_vm10, %v495_v53, %v463_v52 }
 0x1ee   : > { %v414_v44 = vsel %vm413_vm9, %v408_v22, %v410_v15  ;;  %v501_v13 = vsel %vm500_vm11, %v498_v5, %v1643_v6  ;;  %v595_v15 = vand.u32 4294901760, %v1707_v3 }
 0x1ef   : > { %v418_v54 = vsel %vm1607_vm5, %v414_v44, 0.0 }
 0x1f0   : > { %v471_v2 = vrot.slane %v418_v54, 3  ;;  %v596_v28 = vsub.f32 %v1707_v3, %v595_v15 }
 0x1f1   : > { %v421_v38 = vpop.permute.xlu0 %420  ;;  %v425_v39 = vpop.permute.xlu1 %424 }
 0x1f2   : > { %v426_v48 = vsel %vm278_vm4, %v421_v38, %v423_v21  ;;  %v427_v51 = vsel %vm278_vm4, %v423_v21, %v425_v39  ;;  %vm503_vm4 = vcmask 1044480   ;;  %v597_v44 = vand.u32 4294901760, %v596_v28 }
 0x1f3   : > { %v430_v59 = vsel %vm1613_vm6, %v426_v48, 0.0  ;;  %v431_v62 = vsel %vm1622_vm8, %v427_v51, 0.0  ;;  %vm506_vm6 = vcmask 1045504   ;;  %v504_v17 = vsel %vm503_vm4, %v501_v13, %v471_v2 }
 0x1f4   : > { %v477_v8 = vrot.slane %v430_v59, 2  ;;  %v478_v11 = vrot.slane %v431_v62, 2  ;;  %v505_v20 = vsel %vm503_vm4, %v502_v16, %v472_v7 }
 0x1f5   : > { %v437_v55 = vpop.permute.xlu0 %436  ;;  %v435_v56 = vpop.permute.xlu1 %434 }
 0x1f6   : > { %v439_v60 = vsel %vm254_vm2, %v435_v56, %v437_v55  ;;  %v507_v6 = vsel %vm506_vm6, %v504_v17, %v477_v8  ;;  %v508_v25 = vsel %vm506_vm6, %v505_v20, %v478_v11 }
 0x1f7   : > { %v443_v0 = vsel %vm1618_vm7, %v439_v60, 0.0  ;;  %vm509_vm7 = vcmask 1046528  }
 0x1f8   : > { %v513_v4 = vsel %vm491_vm0, %v443_v0, 1.0 }
 0x1f9   : > { %v522_v9 = vsel %vm494_vm1, %v513_v4, 0  ;;  %v484_v36 = vpop.permute.xlu0 %483  ;;  %v433_v10 = vpop.permute.xlu1 %432  ;;  %v1015_v4 = vld [vmem:[%s1562_s8] sm:$0xff]  ;;  %s1313_s8 = scalar_lea.vmem %s1312_s19, 256 }
 0x1fa   : > { %v528_v35 = vand.u32 4294901760, %v522_v9  ;;  %v438_v12 = vsel %vm254_vm2, %v433_v10, %v435_v56  ;;  %p1315_p9 = scmp.lt.s32.totalorder %s1313_s8, %s1307_s27 }
 0x1fb   : > { %v442_v14 = vsel %vm1607_vm5, %v438_v12, 0.0 }
 0x1fc   : > { %v617_v18 = vsub.f32 %v522_v9, %v528_v35  ;;  %v512_v19 = vsel %vm491_vm0, %v442_v14, 1.0  ;;  %p1316_p0 = por %p1315_p9, %p1314_p8 }
 0x1fd   : > { %v519_v21 = vsel %vm494_vm1, %v512_v19, 0  ;;  %v482_v22 = vpop.permute.xlu0 %481  ;;  %v486_v29 = vpop.permute.xlu1 %485 }
 0x1fe   : > { %v530_v23 = vand.u32 4294901760, %v519_v21  ;;  %v487_v24 = vsel %vm265_vm3, %v482_v22, %v484_v36  ;;  %v488_v63 = vsel %vm265_vm3, %v484_v36, %v486_v29  ;;  %v618_v34 = vand.u32 4294901760, %v617_v18  ;;  %p1317_p1 = pnand %p1316_p0, %p1310_p5 }
 0x1ff   : > { %v510_v26 = vsel %vm509_vm7, %v507_v6, %v487_v24  ;;  %v511_v27 = vsel %vm509_vm7, %v508_v25, %v488_v63 }
 0x200   : > { %v623_v30 = vsub.f32 %v519_v21, %v530_v23  ;;  %v526_v31 = vand.u32 4294901760, %v510_v26  ;;  %v524_v32 = vand.u32 4294901760, %v511_v27  ;;  %v619_v46 = vsub.f32 %v617_v18, %v618_v34 }
 0x202   : > { %v611_v37 = vsub.f32 %v510_v26, %v526_v31  ;;  %v605_v38 = vsub.f32 %v511_v27, %v524_v32  ;;  %v1147_v39 = vpack.c.bf16 %v528_v35, %v524_v32  ;;  %v1149_v41 = vpack.c.bf16 %v530_v23, %v526_v31 }
 0x203   : > { %v624_v42 = vand.u32 4294901760, %v623_v30  ;;  %v620_v53 = vand.u32 4294901760, %v619_v46 }
 0x204   : > { %v612_v43 = vand.u32 4294901760, %v611_v37  ;;  %1148 = vmatprep.subr.bf16.mxu1 %v1147_v39  ;;  %1160 = vmatprep.subr.bf16.mxu0 %v1147_v39  ;;  %v606_v45 = vand.u32 4294901760, %v605_v38  ;;  %v1155_v58 = vpack.c.bf16 %v617_v18, %v605_v38  ;;  %v1157_v59 = vpack.c.bf16 %v623_v30, %v611_v37 }
 0x205   : > { %1150 = vmatpush1.bf16.msra.mxu1 %v1149_v41  ;;  %1162 = vmatpush1.bf16.msra.mxu0 %v1149_v41  ;;  %v625_v47 = vsub.f32 %v623_v30, %v624_v42 }
 0x206   : > { %v613_v48 = vsub.f32 %v611_v37, %v612_v43  ;;  %v1163_v49 = vpack.c.bf16 %v618_v34, %v606_v45  ;;  %v1165_v50 = vpack.c.bf16 %v624_v42, %v612_v43  ;;  %v607_v51 = vsub.f32 %v605_v38, %v606_v45 }
 0x207   : > { %v626_v55 = vand.u32 4294901760, %v625_v47 }
 0x208   : > { %598 = vmatmul.mubr.f32.vlgmr.msra.gmra.mrb[0].mxu1 %v597_v44  ;;  %849 = vmatmul.mubr.f32.vlgmr.msra.gmra.mrb[0].mxu0 %v595_v15  ;;  %v608_v52 = vand.u32 4294901760, %v607_v51  ;;  %v614_v54 = vand.u32 4294901760, %v613_v48 }
 0x209   : > { %1164 = vmatprep.subr.bf16.mxu0 %v1163_v49  ;;  %688 = vmatprep.mubr.f32.mxu1 %v1381_v1 }
 0x20a   : > { %1166 = vmatpush1.bf16.msra.mxu0 %v1165_v50  ;;  %v1151_v56 = vpack.c.bf16 %v620_v53, %v608_v52  ;;  %v1153_v57 = vpack.c.bf16 %v626_v55, %v614_v54  ;;  %931 = vmatprep.mubr.f32.mxu0 %v1381_v1 }
 0x20b   : > { %1168 = vmatprep.subr.bf16.mxu0 %v1147_v39 }
 0x20c   : > { %1152 = vmatprep.subr.bf16.mxu1 %v1151_v56 }
 0x20d   : > { %1154 = vmatpush1.bf16.msra.mxu1 %v1153_v57 }
 0x20e   : > { %1156 = vmatprep.subr.bf16.mxu1 %v1155_v58 }
 0x210   : > { %690 = vmatmul.mubr.f32.vlgmr.msra.gmra.mrb[0].mxu1 %v1681_v40  ;;  %933 = vmatmul.mubr.f32.vlgmr.msra.gmra.mrb[0].mxu0 %v1681_v40 }
 0x211   : > { %1170 = vmatpush1.bf16.msra.mxu0 %v1149_v41  ;;  %1158 = vmatpush1.bf16.msra.mxu1 %v1157_v59 }
 0x212   : > { %768 = vmatprep.mubr.f32.mxu1 %v1381_v1  ;;  %1007 = vmatprep.mubr.f32.mxu0 %v1381_v1 }
 0x218   : > { %771 = vmatmul.mubr.f32.vlgmr.msra.gmra.mrb[0].mxu1 %v1707_v3  ;;  %1009 = vmatmul.mubr.f32.vlgmr.msra.gmra.mrb[0].mxu0 %v1681_v40 }
 0x2eb   : > { %v772_v60 = vpop.f32.mrb[0].mxu1  ;;  %v1010_v61 = vpop.f32.mrb[0].mxu0 }
 0x2ec   : > { %v1171_v62 = vadd.f32 %v1010_v61, %v772_v60  ;;  %v774_v0 = vpop.f32.mrb[1].mxu1  ;;  %v1012_v5 = vpop.f32.mrb[1].mxu0 }
 0x2ed   : > { %v1172_v2 = vadd.f32 %v1012_v5, %v774_v0 }
 0x2ef   : > { %v1018_v33 = vcombine.low %v1171_v62, %v1172_v2 }
 0x2f1   : > { %v1020_v7 = vadd.f32 %v1018_v33, %v1015_v4 }
 0x2f3   : > { %1021 = vst [vmem:[%s224_s30] sm:$0xff] %v1020_v7 }
 0x2f4   : > { %1320 = shalt.err (!%p1317_p1)
}
 0x2f5   : > { %s1321_s11 = scalar_lea.hbm %s1747_s4, 128  ;;  %s1325_s26 = scalar_lea.hbm %s1794_s3, 256 }
 0x2f6   : > { %p1322_p11 = scmp.ne.s32.totalorder %s1747_s4, %s1321_s11  ;;  %p1326_p4 = scmp.lt.u32.totalorder %s1747_s4, %s1794_s3 }
 0x2f7   : > { %p1327_p10 = scmp.lt.u32.totalorder %s1325_s26, %s1321_s11  ;;  %p1329_p13 = scmp.lt.u32.totalorder %s1321_s11, %s1747_s4 }
 0x2f8   : > { %p1323_p12 = pnand %p1322_p11, %p1815_p3 }
 0x2f9   : > { %p1328_p6 = por %p1327_p10, %p1326_p4 }
 0x2fa   : > { %p1324_p2 = pneg %p1323_p12 }
 0x2fb   : > { %p1330_p7 = por %p1329_p13, %p1328_p6 }
 0x2fd   : > { %p1331_p5 = pnand %p1330_p7, %p1324_p2 }
 0x2ff   : > { %1334 = shalt.err (!%p1331_p5)
}
 0x300   : > { %1188 = dma.vmem_to_hbm [thread:$0]  (%p1815_p3), %s1749_s17, 128, %s1747_s4, %s1023_s22  }
 0x301 PF: > { %s1049_s10 = sand.u32 1, %s1365_s12   ;;  %p1816_p8 = scmp.ne.s32.totalorder %s1800_s25, 0 }
 0x302   : > { %p1817_p9 = scmp.ge.s32.totalorder %s1377_s15, 2  ;;  %s1050_s6 = scalar_lea.sflag [#allocation5], %s1049_s10 }
 0x304   : > { %p1198_p0 = pnand %p1817_p9, %p1816_p8 }
 0x306   : > { %1360 = dma.done.wait (!%p1198_p0), %s1050_s6, 128  }
 0x307   : > { %1362 = vsyncadd (!%p1198_p0), %s1050_s6, 4294967168  ;;  %p19_p1 = scmp.ge.s32.totalorder %s1439_s18, 4   ;;  %s1818_s12 = smov %s1369_s13 }
 0x308   : > { %s1819_s13 = smov %s1373_s14  ;;  %s1820_s14 = smov %s1451_s21 }
 0x309   : > { %s1821_s15 = smov %s1439_s18  ;;  %21 = sbr.rel (!%p19_p1) target bundleno = 7 (0x7), region = 90 }
 0x310   :  { %1055 = vsyncpa [#allocation4], 1 }
 0x311   :  { %1057 = vsyncpa [#allocation4 + $0x1], 1 }
 0x312   :  { %1058 = vsyncpa [#allocation7], 1 }
 0x313   :  { %1060 = vsyncpa [#allocation7 + $0x1], 1 }
 0x314   :  { %1061 = vsyncpa [#allocation5], 1 }
 0x315   :  { %1063 = vsyncpa [#allocation5 + $0x1], 1 }

</bundles_post_ra>
